<compile_context>
chip_gen: v5e
topology: v5e:2x2
jax: 0.10.0
libtpu: 0.0.40
codegen_flags: <defaults>
</compile_context>

<pallas_src>
import functools

import jax
import jax.numpy as jnp
from jax.experimental import pallas as pl
from jax.experimental.pallas import tpu as pltpu


def _round_up(x, m):
    return ((x + m - 1) // m) * m


def _drsl_kernel(pred_ref, labels_ref, out_ref, *, tile_rows, n_total, ragged):
    """One (TN, C) row tile -> (1, 2) partial sums [ce_sum, neg_loss_sum]."""
    i = pl.program_id(0)
    labels = labels_ref[...]                                     # (TN, 1) int32

    def tile_sums(pred, valid_f):
        tn, c = pred.shape
        col = jax.lax.broadcasted_iota(jnp.int32, (tn, c), 1)
        is_label = col == labels                                 # (TN, C) bool
        label_logit = jnp.sum(jnp.where(is_label, pred, 0.0),
                              axis=1, keepdims=True)             # (TN, 1)

        # --- cross entropy (numerically stable log-sum-exp) ---
        row_max = jnp.max(pred, axis=1, keepdims=True)
        lse = jnp.log(jnp.sum(jnp.exp(pred - row_max),
                              axis=1, keepdims=True)) + row_max
        ce_rows = lse - label_logit                              # (TN, 1)

        # --- negative-class spread penalty, PyTorch (p - m)^2 form ---
        row_sum = jnp.sum(pred, axis=1, keepdims=True)
        neg_mean = (row_sum - label_logit) * (1.0 / c)           # mean over dim=1
        d = jnp.where(is_label, 0.0, pred - neg_mean)            # zero label slot
        neg_rows = jnp.sum(d * d, axis=1, keepdims=True)         # (TN, 1)

        if valid_f is not None:                                  # ragged tile only
            ce_rows = ce_rows * valid_f
            neg_rows = neg_rows * valid_f
        return jnp.sum(ce_rows), jnp.sum(neg_rows)

    if not ragged:
        # N is a tile multiple: no per-element row mask anywhere (VALU savings).
        ce_part, neg_part = tile_sums(pred_ref[...].astype(jnp.float32), None)
        out_ref[0, 0] = ce_part
        out_ref[0, 1] = neg_part
    else:
        last = pl.num_programs(0) - 1

        @pl.when(i < last)
        def _full_tile():
            ce_part, neg_part = tile_sums(pred_ref[...].astype(jnp.float32), None)
            out_ref[0, 0] = ce_part
            out_ref[0, 1] = neg_part

        @pl.when(i == last)
        def _ragged_tile():
            row_idx = i * tile_rows + jax.lax.broadcasted_iota(
                jnp.int32, (tile_rows, 1), 0)
            row_valid = row_idx < n_total                        # (TN, 1) bool
            # Zero garbage padding rows so max/exp/log stay finite.
            pred = jnp.where(row_valid, pred_ref[...].astype(jnp.float32), 0.0)
            ce_part, neg_part = tile_sums(pred, row_valid.astype(jnp.float32))
            out_ref[0, 0] = ce_part
            out_ref[0, 1] = neg_part


def drsl_loss(pred, labels, a=1.0, b=0.001,
              max_tile_rows=4096, tile_budget_bytes=4 * 1024 * 1024):
    """Pallas TPU implementation of DRSL.forward(pred, labels) -> scalar."""
    n, c = pred.shape
    labels2d = labels.reshape(n, 1).astype(jnp.int32)
    itemsize = jnp.dtype(pred.dtype).itemsize

    # Row-tile size from the *input* dtype: ~tile_budget_bytes per pred buffer,
    # multiple of 8 sublanes, capped at max_tile_rows (bounds the (tn,1) label
    # block padding to <= 2 MiB per buffer and the f32 temporaries for tiny C).
    bytes_per_row = c * itemsize
    tn = min(max_tile_rows, max(8, tile_budget_bytes // max(bytes_per_row, 1)))
    tn = max(8, (tn // 8) * 8)
    tn = min(tn, _round_up(n, 8))
    num_tiles = pl.cdiv(n, tn)
    ragged = (n % tn) != 0

    # VMEM budget: 2x pred block (input dtype) + 2x padded label block + slack
    # for the in-kernel f32 copies.  TODO(synk): class-axis split for huge C.
    block_bytes = tn * c * itemsize
    label_block_bytes = tn * 512                  # (tn, 1) int32 pads lanes to 128
    vmem_limit = max(48 * 1024 * 1024,
                     2 * block_bytes + 2 * label_block_bytes + 16 * 1024 * 1024)
    vmem_limit = min(vmem_limit, 120 * 1024 * 1024)

    cost = pl.CostEstimate(
        flops=12 * n * c,
        transcendentals=n * c,
        bytes_accessed=pred.size * itemsize + n * 4 + num_tiles * 8,
    )

    partials = pl.pallas_call(
        functools.partial(_drsl_kernel, tile_rows=tn, n_total=n, ragged=ragged),
        out_shape=jax.ShapeDtypeStruct((num_tiles, 2), jnp.float32),
        grid=(num_tiles,),
        in_specs=[
            pl.BlockSpec((tn, c), lambda i: (i, 0)),   # pred row tile (double-buffered)
            pl.BlockSpec((tn, 1), lambda i: (i, 0)),   # labels row tile
        ],
        # Per-tile partial sums -> independent output blocks -> "parallel" grid.
        out_specs=pl.BlockSpec((1, 2), lambda i: (i, 0), memory_space=pltpu.SMEM),
        compiler_params=pltpu.CompilerParams(
            dimension_semantics=("parallel",),
            vmem_limit_bytes=int(vmem_limit),
        ),
        cost_estimate=cost,
    )(pred, labels2d)   # no wrapper-side f32 cast; the kernel casts internally

    ce_sum = jnp.sum(partials[:, 0])
    neg_sum = jnp.sum(partials[:, 1])
    # CE mean divides by the global batch size.
    return a * (ce_sum / n) + b * neg_sum


def drsl_reference(pred, labels, a=1.0, b=0.001):
    """Pure-JAX reference mirroring the PyTorch module (for validation)."""
    n, c = pred.shape
    pred = pred.astype(jnp.float32)
    onehot = jax.nn.one_hot(labels, c, dtype=jnp.float32)
    mask = 1.0 - onehot
    logz = jax.scipy.special.logsumexp(pred, axis=1)
    ce = jnp.mean(logz - jnp.sum(onehot * pred, axis=1))
    neg_mean = jnp.sum(mask * pred, axis=1, keepdims=True) / c
    neg_loss = jnp.sum(mask * (pred - neg_mean) ** 2)
    return a * ce + b * neg_loss


if __name__ == "__main__":
    key = jax.random.PRNGKey(0)
    k1, k2, k3, k4, k5, k6 = jax.random.split(key, 6)

    # Test 1: small canonical shape (single tile, non-ragged path).
    N, C = 8, 32
    pred = jax.random.normal(k1, (N, C), dtype=jnp.float32)
    labels = jax.random.randint(k2, (N,), 0, C, dtype=jnp.int32)
    loss = jax.block_until_ready(drsl_loss(pred, labels, a=1.0, b=0.001))
    ref = drsl_reference(pred, labels, a=1.0, b=0.001)
    assert jnp.allclose(loss, ref, rtol=1e-4, atol=1e-5), (loss, ref)

    # Test 2: multi-tile grid with a ragged last tile (exercises the pl.when
    # masked path, the parallel per-tile partial outputs and the global-N mean).
    N2, C2 = 40, 32
    pred2 = jax.random.normal(k3, (N2, C2), dtype=jnp.float32)
    labels2 = jax.random.randint(k4, (N2,), 0, C2, dtype=jnp.int32)
    loss2 = jax.block_until_ready(
        drsl_loss(pred2, labels2, a=1.0, b=0.001, max_tile_rows=16))
    ref2 = drsl_reference(pred2, labels2, a=1.0, b=0.001)
    assert jnp.allclose(loss2, ref2, rtol=1e-4, atol=1e-5), (loss2, ref2)

    # Test 3: bf16 logits (in-kernel cast path), multi-tile, non-ragged.
    N3, C3 = 24, 128
    pred3 = jax.random.normal(k5, (N3, C3), dtype=jnp.float32).astype(jnp.bfloat16)
    labels3 = jax.random.randint(k6, (N3,), 0, C3, dtype=jnp.int32)
    loss3 = jax.block_until_ready(
        drsl_loss(pred3, labels3, a=1.0, b=0.001, max_tile_rows=8))
    ref3 = drsl_reference(pred3, labels3, a=1.0, b=0.001)
    assert jnp.allclose(loss3, ref3, rtol=2e-3, atol=1e-3), (loss3, ref3)

    print("KERNEL_OK")
</pallas_src>

<mosaic_0001>
module attributes {stable_mosaic.version = 11 : i64} {
  func.func @_drsl_kernel(%arg0: i32, %arg1: memref<8x32xf32, #tpu.memory_space<vmem>>, %arg2: memref<8x1xi32, #tpu.memory_space<vmem>>, %arg3: memref<1x2xf32, #tpu.memory_space<smem>>) attributes {dimension_semantics = [#tpu.dimension_semantics<parallel>], iteration_bounds = array<i64: 1>, scalar_prefetch = 0 : i64, scratch_operands = 0 : i64, tpu.core_type = #tpu.core_type<tc>, window_params = [{transform_indices = @transform_0, window_bounds = array<i64: 8, 32>}, {transform_indices = @transform_1, window_bounds = array<i64: 8, 1>}, {transform_indices = @transform_2, window_bounds = array<i64: 1, 2>}]} {
    %c0 = arith.constant 0 : index
    %c0_0 = arith.constant 0 : index
    %0 = vector.load %arg2[%c0, %c0_0] : memref<8x1xi32, #tpu.memory_space<vmem>>, vector<8x1xi32>
    %c0_1 = arith.constant 0 : index
    %c0_2 = arith.constant 0 : index
    %1 = vector.load %arg1[%c0_1, %c0_2] : memref<8x32xf32, #tpu.memory_space<vmem>>, vector<8x32xf32>
    %2 = tpu.iota {dimensions = array<i32: 1>} : vector<8x32xi32>
    %3 = vector.broadcast %0 : vector<8x1xi32> to vector<8x32xi32>
    %4 = arith.cmpi eq, %2, %3 : vector<8x32xi32>
    %cst = arith.constant 0.000000e+00 : f32
    %5 = vector.broadcast %cst : f32 to vector<8x32xf32>
    %6 = arith.select %4, %1, %5 : vector<8x32xi1>, vector<8x32xf32>
    %cst_3 = arith.constant dense<0.000000e+00> : vector<8xf32>
    %7 = vector.multi_reduction <add>, %6, %cst_3 [1] : vector<8x32xf32> to vector<8xf32>
    %8 = vector.shape_cast %7 : vector<8xf32> to vector<8x1xf32>
    %cst_4 = arith.constant dense<0xFF800000> : vector<8xf32>
    %9 = vector.multi_reduction <maximumf>, %1, %cst_4 [1] : vector<8x32xf32> to vector<8xf32>
    %10 = vector.shape_cast %9 : vector<8xf32> to vector<8x1xf32>
    %11 = vector.broadcast %10 : vector<8x1xf32> to vector<8x32xf32>
    %12 = arith.subf %1, %11 : vector<8x32xf32>
    %13 = math.exp %12 : vector<8x32xf32>
    %cst_5 = arith.constant dense<0.000000e+00> : vector<8xf32>
    %14 = vector.multi_reduction <add>, %13, %cst_5 [1] : vector<8x32xf32> to vector<8xf32>
    %15 = vector.shape_cast %14 : vector<8xf32> to vector<8x1xf32>
    %16 = math.log %15 : vector<8x1xf32>
    %17 = arith.addf %16, %10 : vector<8x1xf32>
    %18 = arith.subf %17, %8 : vector<8x1xf32>
    %cst_6 = arith.constant dense<0.000000e+00> : vector<8xf32>
    %19 = vector.multi_reduction <add>, %1, %cst_6 [1] : vector<8x32xf32> to vector<8xf32>
    %20 = vector.shape_cast %19 : vector<8xf32> to vector<8x1xf32>
    %21 = arith.subf %20, %8 : vector<8x1xf32>
    %cst_7 = arith.constant 3.125000e-02 : f32
    %22 = vector.broadcast %cst_7 : f32 to vector<8x1xf32>
    %23 = arith.mulf %21, %22 : vector<8x1xf32>
    %24 = vector.broadcast %23 : vector<8x1xf32> to vector<8x32xf32>
    %25 = arith.subf %1, %24 : vector<8x32xf32>
    %cst_8 = arith.constant 0.000000e+00 : f32
    %26 = vector.broadcast %cst_8 : f32 to vector<8x32xf32>
    %27 = arith.select %4, %26, %25 : vector<8x32xi1>, vector<8x32xf32>
    %28 = arith.mulf %27, %27 : vector<8x32xf32>
    %cst_9 = arith.constant dense<0.000000e+00> : vector<8xf32>
    %29 = vector.multi_reduction <add>, %28, %cst_9 [1] : vector<8x32xf32> to vector<8xf32>
    %30 = vector.shape_cast %29 : vector<8xf32> to vector<8x1xf32>
    %31 = vector.shape_cast %18 : vector<8x1xf32> to vector<1x8x1xf32>
    %cst_10 = arith.constant dense<0.000000e+00> : vector<1xf32>
    %32 = vector.multi_reduction <add>, %31, %cst_10 [1, 2] : vector<1x8x1xf32> to vector<1xf32>
    %33 = vector.shape_cast %32 : vector<1xf32> to vector<1x1x1xf32>
    %34 = vector.extract %33[0, 0, 0] : f32 from vector<1x1x1xf32>
    %35 = vector.shape_cast %30 : vector<8x1xf32> to vector<1x8x1xf32>
    %cst_11 = arith.constant dense<0.000000e+00> : vector<1xf32>
    %36 = vector.multi_reduction <add>, %35, %cst_11 [1, 2] : vector<1x8x1xf32> to vector<1xf32>
    %37 = vector.shape_cast %36 : vector<1xf32> to vector<1x1x1xf32>
    %38 = vector.extract %37[0, 0, 0] : f32 from vector<1x1x1xf32>
    %c0_12 = arith.constant 0 : index
    %c0_13 = arith.constant 0 : index
    %39 = memref.load %arg3[%c0_12, %c0_13] : memref<1x2xf32, #tpu.memory_space<smem>>
    memref.store %34, %arg3[%c0_12, %c0_13] : memref<1x2xf32, #tpu.memory_space<smem>>
    %c0_14 = arith.constant 0 : index
    %c1 = arith.constant 1 : index
    %40 = memref.load %arg3[%c0_14, %c1] : memref<1x2xf32, #tpu.memory_space<smem>>
    memref.store %38, %arg3[%c0_14, %c1] : memref<1x2xf32, #tpu.memory_space<smem>>
    return
  }
  func.func @transform_0(%arg0: i32) -> (i32, i32) {
    %c0_i32 = arith.constant 0 : i32
    %c0_i32_0 = arith.constant 0 : i32
    return %arg0, %c0_i32 : i32, i32
  }
  func.func @transform_1(%arg0: i32) -> (i32, i32) {
    %c0_i32 = arith.constant 0 : i32
    %c0_i32_0 = arith.constant 0 : i32
    return %arg0, %c0_i32 : i32, i32
  }
  func.func @transform_2(%arg0: i32) -> (i32, i32) {
    %c0_i32 = arith.constant 0 : i32
    %c0_i32_0 = arith.constant 0 : i32
    return %arg0, %c0_i32 : i32, i32
  }
}

</mosaic_0001>

<bundles_post_ra>
// kernel: tpu_custom_call.1
= control target key start
LH: loop header
LB: loop body
LE: loop exit
PB: predicated region body
PF: predicated region fallthrough
CT: control target
= control target key end

     0   :  { %s147_s0 = inlined_call_operand.vmem [shape: f32[8,32], index: 0, kind: input, shape index: {}]   ;;  %s148_s1 = inlined_call_operand.vmem [shape: s32[8,1], index: 1, kind: input, shape index: {}]   ;;  %s149_s2 = inlined_call_operand.hbm [shape: f32[1,2], index: 2, kind: output, shape index: {}]  }
   0x1   :  { %v12_v0 = vld [vmem:[%s148_s1] sm:$0xff] }
   0x2   :  { %7 = vsyncpa [#allocation3], 0  ;;  %v114_v1 = vmov 0   ;;  %v13_v2 = vld [vmem:[%s147_s0] sm:$0xff]  ;;  %vm21_vm0 = vcmask 261120   ;;  %v14_v4 = vlaneseq  ;;  %vm49_vm2 = vcmask 7168  }
   0x3   :  { %95 = vset.pattern.permute.xlu0 %v114_v1  ;;  %v25_v3 = vsel %vm21_vm0, %v13_v2, -inf  ;;  %v38_v9 = vsel %vm21_vm0, %v13_v2, 0.0  ;;  %s79_s14 = sshll.u32 %s149_s2, 4  ;;  %s115_s16 = smov [#allocation2]   ;;  %s80_s14 = int_to_ptr.hbm [resolvable:$true] %s79_s14 }
   0x4   :  { %17 = vperm.xlu0 %95, %v12_v0   ;;  %v15_v5 = vand.u32 127, %v14_v4 }
  0x2e   :  { %26 = vmax.xlane.f32.xlu0 %v25_v3 }
  0x76   :  { %v18_v6 = vpop.permute.xlu0 %17 }
  0x77   :  { %vm19_vm1 = vcmp.eq.s32.totalorder %v15_v5, %v18_v6 }
  0x78   :  { %v20_v7 = vsel %vm19_vm1, %v13_v2, 0.0 }
  0x79   :  { %v22_v8 = vsel %vm21_vm0, %v20_v7, 0.0 }
  0x7a   :  { %23 = vadd.xlane.f32.xlu1 %v22_v8 }
  0x82   :  { %39 = vadd.xlane.f32.xlu1 %v38_v9 }
  0xa1   :  { %v27_v10 = vpop.xlane.xlu0 %26 }
  0xa2   :  { %v28_v11 = vsub.f32 %v13_v2, %v27_v10 }
  0xa4   :  { %v29_v12 = vmul.f32 1.442695, %v28_v11 }
  0xa6   :  { %96 = vpow2.f32 %v29_v12 }
  0xac   :  { %v97_v13 = vpop.eup %96 }
  0xad   :  { %v31_v14 = vsel %vm21_vm0, %v97_v13, 0.0 }
  0xae   :  { %32 = vadd.xlane.f32.xlu2 %v31_v14 }
  0xed   :  { %v24_v15 = vpop.xlane.xlu1 %23 }
  0xf5   :  { %v40_v16 = vpop.xlane.xlu1 %39 }
  0xf6   :  { %v41_v17 = vsub.f32 %v40_v16, %v24_v15 }
  0xf8   :  { %v42_v18 = vmul.f32 0.03125, %v41_v17 }
  0xfa   :  { %v43_v19 = vsub.f32 %v13_v2, %v42_v18 }
  0xfc   :  { %v44_v20 = vsel %vm19_vm1, 0.0, %v43_v19 }
  0xfd   :  { %v45_v21 = vmul.f32 %v44_v20, %v44_v20 }
  0xff   :  { %v46_v22 = vsel %vm21_vm0, %v45_v21, 0.0 }
 0x100   :  { %47 = vadd.xlane.f32.xlu2 %v46_v22 }
 0x121   :  { %v33_v23 = vpop.xlane.xlu2 %32 }
 0x122   :  { %98 = vlog2.f32 %v33_v23 }
 0x128   :  { %v99_v24 = vpop.eup %98 }
 0x129   :  { %v35_v25 = vmul.f32 0.6931472, %v99_v24 }
 0x12b   :  { %v36_v26 = vadd.f32 %v35_v25, %v27_v10 }
 0x12d   :  { %v37_v27 = vsub.f32 %v36_v26, %v24_v15 }
 0x12f   :  { %v50_v28 = vsel %vm49_vm2, %v37_v27, 0.0 }
 0x130   :  { %51 = vadd.xlane.f32.xlu1 %v50_v28 }
 0x173   :  { %v48_v29 = vpop.xlane.xlu2 %47 }
 0x174   :  { %v60_v30 = vsel %vm49_vm2, %v48_v29, 0.0 }
 0x175   :  { %61 = vadd.xlane.f32.xlu2 %v60_v30 }
 0x1a3   :  { %v52_v31 = vpop.xlane.xlu1 %51 }
 0x1a4   :  { %v53_v32 = vrot.slane %v52_v31, 4 }
 0x1a6   :  { %v54_v33 = vadd.f32 %v53_v32, %v52_v31 }
 0x1a8   :  { %v55_v34 = vrot.slane %v54_v33, 2 }
 0x1aa   :  { %v56_v35 = vadd.f32 %v55_v34, %v54_v33 }
 0x1ac   :  { %v57_v36 = vrot.slane %v56_v35, 1 }
 0x1ae   :  { %v58_v37 = vadd.f32 %v57_v36, %v56_v35 }
 0x1b0   :  { %89 = vpush %v58_v37 }
 0x1e1   :  { %s90_s0 = spop %89 }
 0x1e2   :  { %71 = sst [smem:[#allocation2]] %s90_s0 }
 0x1e8   :  { %v62_v38 = vpop.xlane.xlu2 %61 }
 0x1e9   :  { %v63_v39 = vrot.slane %v62_v38, 4 }
 0x1eb   :  { %v64_v40 = vadd.f32 %v63_v39, %v62_v38 }
 0x1ed   :  { %v65_v41 = vrot.slane %v64_v40, 2 }
 0x1ef   :  { %v66_v42 = vadd.f32 %v65_v41, %v64_v40 }
 0x1f1   :  { %v67_v43 = vrot.slane %v66_v42, 1 }
 0x1f3   :  { %v68_v44 = vadd.f32 %v67_v43, %v66_v42 }
 0x1f5   :  { %91 = vpush %v68_v44 }
 0x226   :  { %s92_s15 = spop %91 }
 0x227   :  { %73 = sst [smem:[#allocation2 + $0x1]] %s92_s15 }
 0x228   :  { %82 = dma.smem_to_hbm %s115_s16, 16, %s80_s14, [#allocation3]  }
 0x229   :  { %112 = dma.done.wait [#allocation3], 16  }
 0x22a   :  { %113 = vsyncadd [#allocation3], 4294967280 }
 0x22b   :  { %87 = sfence }
 0x22c   :  { %88 = vsyncpa [#allocation3], 1 }

</bundles_post_ra>
